<compile_context>
chip_gen: v7x
topology: tpu7x:2x2x1
jax: 0.10.0
libtpu: 0.0.40
codegen_flags: <defaults>
</compile_context>

<pallas_src>
import functools
import math

import jax
import jax.numpy as jnp
from jax.experimental import pallas as pl
from jax.experimental.pallas import tpu as pltpu


# ---------------------------------------------------------------------------
# Buffer init (module __init__): the `pe` buffer, shape (max_len, 1, d_model).
# ---------------------------------------------------------------------------
def make_positional_encoding(d_model: int, max_len: int = 5000) -> jnp.ndarray:
    position = jnp.arange(0, max_len, dtype=jnp.float32)[:, None]           # (max_len, 1)
    div_term = jnp.exp(
        jnp.arange(0, d_model, 2, dtype=jnp.float32) * (-math.log(10000.0) / d_model)
    )                                                                        # (d_model/2,)
    pe = jnp.zeros((max_len, d_model), dtype=jnp.float32)
    pe = pe.at[:, 0::2].set(jnp.sin(position * div_term))
    pe = pe.at[:, 1::2].set(jnp.cos(position * div_term))
    # unsqueeze(0).transpose(0, 1) -> (max_len, 1, d_model)
    return pe[:, None, :]


# ---------------------------------------------------------------------------
# Small helpers.
# ---------------------------------------------------------------------------
def _round_up(x, m):
    return (x + m - 1) // m * m


def _lcm(a, b):
    return a * b // math.gcd(a, b)


def _dropout_threshold(p: float) -> int:
    # keep iff uniform uint32 bits >= p * 2^32 (keep prob = 1 - p, ~2^-32 bias)
    return min(int(round(float(p) * 4294967296.0)), 4294967295)


def _auto_budgets():
    """(block_bytes, vmem_limit_bytes) tuned per VMEM generation."""
    vmem_cap = 64 * 1024 * 1024
    try:
        info = pltpu.get_tpu_info()
        vmem_cap = int(getattr(info, "vmem_capacity_bytes", vmem_cap))
    except Exception:
        pass
    if vmem_cap >= 96 * 1024 * 1024:
        # v5e / v6e: 128 MiB physical VMEM -> bigger blocks amortize per-step
        # overhead (~0.35 us) and push closer to the HBM roofline.
        return 8 * 1024 * 1024, 64 * 1024 * 1024
    # v7x: 64 MiB physical (32 MiB scoped default) -> tighter budget.
    return 4 * 1024 * 1024, 32 * 1024 * 1024


def _choose_seq_tile(S, bytes_per_pos, *, align, block_bytes, total_bytes,
                     split_threshold=2 * 1024 * 1024):
    """Sequence positions per block: ~block_bytes per block, `align`-aligned."""
    ts = max(1, min(S, block_bytes // max(1, bytes_per_pos)))
    # v7x has 2 TensorCores: make sure non-trivial inputs give grid >= 2 so the
    # "parallel" axis can shard the stream across both (neutral on v5e/v6e).
    if total_bytes >= split_threshold:
        ts = min(ts, pl.cdiv(S, 2))
    if ts < S:
        ts = min(S, max(align, (ts // align) * align))
    return ts


# ---------------------------------------------------------------------------
# Kernels.
# ---------------------------------------------------------------------------
def _pe_add_kernel(x_ref, pe_ref, o_ref):
    # Eval mode (dropout identity).  x_ref: (ts, B, D); pe_ref: (ts, 1, D) f32.
    # The add broadcasts pe over the batch (sublane) axis implicitly -- no
    # materialized (ts*B, D) temp in VMEM.
    x = x_ref[...].astype(jnp.float32)
    o_ref[...] = (x + pe_ref[...]).astype(o_ref.dtype)


def _broadcast_pe(pe, batch):
    # pe: (ts, D) -> (ts*batch, D); rows of the flattened x are s-major.
    ts, d = pe.shape
    return jnp.broadcast_to(pe[:, None, :], (ts, batch, d)).reshape(ts * batch, d)


def _pe_add_dropout_prng_kernel(seed_ref, x_ref, pe_ref, o_ref, *, batch, p):
    # Training mode with in-kernel PRNG.  Lane-dense 2-D slab blocks:
    # x_ref/o_ref: (ts*B, D), pe_ref: (ts, D) f32.  The per-step random bits
    # are generated on-chip (no HBM bits stream).
    pltpu.prng_seed(seed_ref[0], pl.program_id(0))
    bits = pltpu.bitcast(pltpu.prng_random_bits(x_ref.shape), jnp.uint32)
    keep = bits >= jnp.uint32(_dropout_threshold(p))
    scale = 1.0 / (1.0 - p)
    y = (x_ref[...].astype(jnp.float32) + _broadcast_pe(pe_ref[...], batch)) * scale
    o_ref[...] = jnp.where(keep, y, 0.0).astype(o_ref.dtype)


def _pe_add_dropout_bits_kernel(x_ref, pe_ref, bits_ref, o_ref, *, batch, p):
    # Non-TPU fallback (interpret / CPU): dropout bits streamed in.
    keep = bits_ref[...] >= jnp.uint32(_dropout_threshold(p))
    scale = 1.0 / (1.0 - p)
    y = (x_ref[...].astype(jnp.float32) + _broadcast_pe(pe_ref[...], batch)) * scale
    o_ref[...] = jnp.where(keep, y, 0.0).astype(o_ref.dtype)


# ---------------------------------------------------------------------------
# Wrapper (the module's forward).
# ---------------------------------------------------------------------------
def positional_encoding_forward(x, pe, *, dropout_p=0.5, training=False,
                                rng_key=None, block_bytes=None,
                                vmem_limit_bytes=None,
                                min_pallas_bytes=256 * 1024):
    """x: (S, B, D).  pe: (max_len, 1, D) float32 buffer.  Returns (S, B, D)."""
    S, B, D = x.shape
    out_dtype = jnp.promote_types(x.dtype, pe.dtype)      # PyTorch add promotion
    itemsize = jnp.dtype(x.dtype).itemsize
    total_bytes = S * B * D * itemsize
    pe_slice = pe[:S].astype(jnp.float32)                 # (S, 1, D), stays fp32

    # torch.nn.Dropout(p=1.0) in training mode zeroes everything.
    if training and float(dropout_p) >= 1.0:
        return jnp.zeros((S, B, D), out_dtype)

    # Tiny-input fallback: custom-call + grid overhead dominates below ~256 KiB.
    if total_bytes < min_pallas_bytes:
        y = x.astype(jnp.float32) + pe_slice
        if training and dropout_p > 0.0:
            if rng_key is None:
                rng_key = jax.random.PRNGKey(0)
            keep = (jax.random.bits(rng_key, (S, B, D), jnp.uint32)
                    >= jnp.uint32(_dropout_threshold(dropout_p)))
            y = jnp.where(keep, y * (1.0 / (1.0 - float(dropout_p))), 0.0)
        return y.astype(out_dtype)

    if block_bytes is None or vmem_limit_bytes is None:
        auto_block, auto_vmem = _auto_budgets()
        block_bytes = auto_block if block_bytes is None else block_bytes
        vmem_limit_bytes = auto_vmem if vmem_limit_bytes is None else vmem_limit_bytes

    compiler_params = pltpu.CompilerParams(
        # Every grid step writes a disjoint output block -> shardable across
        # v7x's two TensorCores; neutral on single-TC v5e/v6e.
        # TODO(synk): try pltpu.CORE_PARALLEL here on v7x and keep it if an
        # xprof trace shows both TCs active.
        dimension_semantics=("parallel",),
        vmem_limit_bytes=vmem_limit_bytes,
    )

    pack = max(8, 32 // itemsize)          # sublane rows per VMEM tile for x dtype
    out_itemsize = jnp.dtype(out_dtype).itemsize

    # ------------------------------------------------------------------ eval
    if not training or dropout_p == 0.0:
        # 3-D blocks: (ts, B, D) for x/out, (ts, 1, D) for pe.  Last two block
        # dims are the full array dims -> layout-legal for any dtype / B.
        bytes_per_pos = max(_round_up(B, pack) * _round_up(D, 128) * itemsize,
                            _round_up(B, 8) * _round_up(D, 128) * out_itemsize)
        ts = _choose_seq_tile(S, bytes_per_pos, align=1,
                              block_bytes=block_bytes, total_bytes=total_bytes)
        grid = (pl.cdiv(S, ts),)
        # TODO(synk): for B <= 4, compute pe on the fly in-kernel (iota + sin/cos
        # on the idle EUP) instead of DMA'ing the (ts, 1, D) pe block each step.
        return pl.pallas_call(
            _pe_add_kernel,
            out_shape=jax.ShapeDtypeStruct((S, B, D), out_dtype),
            grid=grid,
            in_specs=[pl.BlockSpec((ts, B, D), lambda i: (i, 0, 0)),
                      pl.BlockSpec((ts, 1, D), lambda i: (i, 0, 0))],
            out_specs=pl.BlockSpec((ts, B, D), lambda i: (i, 0, 0)),
            compiler_params=compiler_params,
        )(x, pe_slice)

    # -------------------------------------------------------------- training
    if rng_key is None:
        rng_key = jax.random.PRNGKey(0)

    # Lane-dense 2-D slab layout so the in-kernel PRNG draws a plain 2-D block
    # of bits: x (S, B, D) -> (S*B, D) is a free contiguous view.
    x2 = x.reshape(S * B, D)
    pe2 = pe_slice[:, 0, :]                                # (S, D) f32

    # (ts*B) must be a multiple of x's sublane pack and ts a multiple of 8
    # (fp32 pe block) whenever the block is not full-extent.
    align_train = _lcm(8, pack // math.gcd(B, pack))
    bytes_per_pos = max(B * _round_up(D, 128) * itemsize,
                        B * _round_up(D, 128) * out_itemsize)
    ts = _choose_seq_tile(S, bytes_per_pos, align=align_train,
                          block_bytes=block_bytes, total_bytes=total_bytes)
    grid = (pl.cdiv(S, ts),)
    out_shape2 = jax.ShapeDtypeStruct((S * B, D), out_dtype)
    p = float(dropout_p)

    if jax.default_backend() == "tpu":
        # In-kernel PRNG: seed (SMEM scalar prefetch) + per-step program_id.
        seed = jax.random.randint(rng_key, (1,), 0, jnp.iinfo(jnp.int32).max,
                                  dtype=jnp.int32)
        grid_spec = pltpu.PrefetchScalarGridSpec(
            num_scalar_prefetch=1,
            grid=grid,
            in_specs=[pl.BlockSpec((ts * B, D), lambda i, seed_ref: (i, 0)),
                      pl.BlockSpec((ts, D), lambda i, seed_ref: (i, 0))],
            out_specs=pl.BlockSpec((ts * B, D), lambda i, seed_ref: (i, 0)),
        )
        y2 = pl.pallas_call(
            functools.partial(_pe_add_dropout_prng_kernel, batch=B, p=p),
            out_shape=out_shape2,
            grid_spec=grid_spec,
            compiler_params=compiler_params,
        )(seed, x2, pe2)
    else:
        # Fallback for backends without pltpu.prng_* lowering.
        bits = jax.random.bits(rng_key, (S * B, D), jnp.uint32)
        y2 = pl.pallas_call(
            functools.partial(_pe_add_dropout_bits_kernel, batch=B, p=p),
            out_shape=out_shape2,
            grid=grid,
            in_specs=[pl.BlockSpec((ts * B, D), lambda i: (i, 0)),
                      pl.BlockSpec((ts, D), lambda i: (i, 0)),
                      pl.BlockSpec((ts * B, D), lambda i: (i, 0))],
            out_specs=pl.BlockSpec((ts * B, D), lambda i: (i, 0)),
            compiler_params=compiler_params,
        )(x2, pe2, bits)
    return y2.reshape(S, B, D)


# ---------------------------------------------------------------------------
# Main.
# ---------------------------------------------------------------------------
if __name__ == "__main__":
    d_model = 128     # lane-dense width (multiple of 128)
    max_len = 64
    seq_len = 16
    batch = 8

    key = jax.random.PRNGKey(0)
    kx, kd = jax.random.split(key)
    x = jax.random.normal(kx, (seq_len, batch, d_model), dtype=jnp.float32)
    pe = make_positional_encoding(d_model, max_len)
    ref = x + pe[:seq_len]                                 # (S, B, D)

    # 1) Eval mode (dropout identity), single block, Pallas path forced.
    out = positional_encoding_forward(x, pe, dropout_p=0.5, training=False,
                                      min_pallas_bytes=0)
    out = jax.block_until_ready(out)
    assert out.shape == (seq_len, batch, d_model)
    assert out.dtype == jnp.float32
    assert jnp.allclose(out, ref, atol=1e-6), "eval-mode mismatch vs reference"

    # 2) Eval mode with a forced multi-step grid (exercises the pipelined path).
    small_block = 8 * batch * d_model * 4                  # 8 seq positions/block
    out_tiled = positional_encoding_forward(
        x, pe, dropout_p=0.5, training=False, min_pallas_bytes=0,
        block_bytes=small_block)
    out_tiled = jax.block_until_ready(out_tiled)
    assert jnp.allclose(out_tiled, ref, atol=1e-6), "tiled eval mismatch"

    # 3) Training mode: in-kernel PRNG dropout.  Bits are drawn on-chip, so we
    #    check structural properties: every element is 0 or (x+pe)/(1-p), the
    #    drop fraction is ~p, and the output is deterministic for a fixed key.
    p = 0.5
    out_tr = positional_encoding_forward(x, pe, dropout_p=p, training=True,
                                         rng_key=kd, min_pallas_bytes=0)
    out_tr = jax.block_until_ready(out_tr)
    assert out_tr.shape == (seq_len, batch, d_model)
    scale = 1.0 / (1.0 - p)
    dropped = out_tr == 0.0
    kept_ok = jnp.isclose(out_tr, ref * scale, rtol=1e-5, atol=1e-5)
    assert bool(jnp.all(dropped | kept_ok)), "training-mode values mismatch"
    frac = float(jnp.mean(dropped.astype(jnp.float32)))
    assert abs(frac - p) < 0.08, f"drop fraction {frac} far from p={p}"
    out_tr2 = jax.block_until_ready(
        positional_encoding_forward(x, pe, dropout_p=p, training=True,
                                    rng_key=kd, min_pallas_bytes=0))
    assert jnp.array_equal(out_tr, out_tr2), "training-mode not deterministic"

    # 4) Tiny-input XLA fallback (default threshold) still matches.
    out_fb = jax.block_until_ready(
        positional_encoding_forward(x, pe, dropout_p=0.5, training=False))
    assert jnp.allclose(out_fb, ref, atol=1e-6), "fallback path mismatch"

    print("KERNEL_OK")
</pallas_src>

<mosaic_0001>
module attributes {stable_mosaic.version = 11 : i64} {
  func.func @_pe_add_kernel(%arg0: i32, %arg1: memref<16x8x128xf32, #tpu.memory_space<vmem>>, %arg2: memref<16x1x128xf32, #tpu.memory_space<vmem>>, %arg3: memref<16x8x128xf32, #tpu.memory_space<vmem>>) attributes {dimension_semantics = [#tpu.dimension_semantics<parallel>], iteration_bounds = array<i64: 1>, scalar_prefetch = 0 : i64, scratch_operands = 0 : i64, tpu.core_type = #tpu.core_type<tc>, window_params = [{transform_indices = @transform_0, window_bounds = array<i64: 16, 8, 128>}, {transform_indices = @transform_1, window_bounds = array<i64: 16, 1, 128>}, {transform_indices = @transform_2, window_bounds = array<i64: 16, 8, 128>}]} {
    %c0 = arith.constant 0 : index
    %c0_0 = arith.constant 0 : index
    %c0_1 = arith.constant 0 : index
    %0 = vector.load %arg1[%c0, %c0_0, %c0_1] : memref<16x8x128xf32, #tpu.memory_space<vmem>>, vector<16x8x128xf32>
    %c0_2 = arith.constant 0 : index
    %c0_3 = arith.constant 0 : index
    %c0_4 = arith.constant 0 : index
    %1 = vector.load %arg2[%c0_2, %c0_3, %c0_4] : memref<16x1x128xf32, #tpu.memory_space<vmem>>, vector<16x1x128xf32>
    %2 = vector.broadcast %1 : vector<16x1x128xf32> to vector<16x8x128xf32>
    %3 = arith.addf %0, %2 : vector<16x8x128xf32>
    %c0_5 = arith.constant 0 : index
    %c0_6 = arith.constant 0 : index
    %c0_7 = arith.constant 0 : index
    %4 = vector.load %arg3[%c0_5, %c0_6, %c0_7] : memref<16x8x128xf32, #tpu.memory_space<vmem>>, vector<16x8x128xf32>
    tpu.vector_store %arg3[%c0_5, %c0_6, %c0_7], %3 {strides = array<i32>} : memref<16x8x128xf32, #tpu.memory_space<vmem>>, vector<16x8x128xf32>,
    return
  }
  func.func @transform_0(%arg0: i32) -> (i32, i32, i32) {
    %c0_i32 = arith.constant 0 : i32
    %c0_i32_0 = arith.constant 0 : i32
    %c0_i32_1 = arith.constant 0 : i32
    return %arg0, %c0_i32, %c0_i32_0 : i32, i32, i32
  }
  func.func @transform_1(%arg0: i32) -> (i32, i32, i32) {
    %c0_i32 = arith.constant 0 : i32
    %c0_i32_0 = arith.constant 0 : i32
    %c0_i32_1 = arith.constant 0 : i32
    return %arg0, %c0_i32, %c0_i32_0 : i32, i32, i32
  }
  func.func @transform_2(%arg0: i32) -> (i32, i32, i32) {
    %c0_i32 = arith.constant 0 : i32
    %c0_i32_0 = arith.constant 0 : i32
    %c0_i32_1 = arith.constant 0 : i32
    return %arg0, %c0_i32, %c0_i32_0 : i32, i32, i32
  }
}

</mosaic_0001>

<bundles_post_ra>
// kernel: tpu_custom_call.1
= control target key start
LH: loop header
LB: loop body
LE: loop exit
PB: predicated region body
PF: predicated region fallthrough
CT: control target
= control target key end

     0   :  { %7 = vsyncpa [#allocation3], 0  ;;  %s377_s0 = inlined_call_operand.hbm [shape: f32[16,8,128], index: 0, kind: input, shape index: {}]   ;;  %s378_s1 = inlined_call_operand.hbm [shape: f32[16,1,128], index: 1, kind: input, shape index: {}]   ;;  %s379_s2 = inlined_call_operand.hbm [shape: f32[16,8,128], index: 2, kind: output, shape index: {}]  }
   0x1   :  { %8 = vsyncpa [#allocation6], 0 }
   0x2   :  { %9 = vsyncpa [#allocation4], 0  ;;  %s313_s9 = smov [#allocation2]   ;;  %s241_s13 = scalar_lea.hbm %s377_s0, 2048 }
   0x3   :  { %s15_s10 = sshll.u32 %s313_s9, 4  ;;  %p242_p0 = scmp.ne.s32.totalorder %s377_s0, %s241_s13  ;;  %s16_s10 = int_to_ptr.vmem [resolvable:$true] %s15_s10 }
   0x4   :  { %p245_p1 = scmp.lt.u32.totalorder %s241_s13, %s377_s0 }
   0x6   :  { %p247_p2 = pnand %p245_p1, %p242_p0 }
   0x8   :  { %250 = shalt.err (!%p247_p2)
}
   0x9   :  { %s251_s18 = scalar_lea.vmem %s16_s10, 2048  ;;  %p256_p4 = scmp.lt.s32.totalorder %s16_s10, %s16_s10 }
   0xa   :  { %p252_p3 = scmp.ne.s32.totalorder %s16_s10, %s251_s18  ;;  %p257_p5 = scmp.lt.s32.totalorder %s251_s18, %s251_s18 }
   0xc   :  { %p258_p6 = por %p257_p5, %p256_p4 }
   0xe   :  { %p259_p7 = pnand %p258_p6, %p252_p3 }
  0x10   :  { %262 = shalt.err (!%p259_p7)
}
  0x11   :  { %s314_s19 = smov 128   ;;  %s315_s20 = smov 8  }
  0x12   :  { %21 = dma.hbm_to_vmem [thread:$0]  %s377_s0, 2048, %s16_s10, [#allocation3], %s314_s19, %s314_s19, %s315_s20  }
  0x13   :  { %s316_s23 = smov [#allocation5]   ;;  %s263_s27 = scalar_lea.hbm %s378_s1, 256 }
  0x14   :  { %s27_s24 = sshll.u32 %s316_s23, 4  ;;  %p264_p8 = scmp.ne.s32.totalorder %s378_s1, %s263_s27  ;;  %s28_s24 = int_to_ptr.vmem [resolvable:$true] %s27_s24 }
  0x15   :  { %p267_p9 = scmp.lt.u32.totalorder %s263_s27, %s378_s1 }
  0x17   :  { %p269_p10 = pnand %p267_p9, %p264_p8 }
  0x19   :  { %272 = shalt.err (!%p269_p10)
}
  0x1a   :  { %s273_s4 = scalar_lea.vmem %s28_s24, 256  ;;  %p278_p12 = scmp.lt.s32.totalorder %s28_s24, %s28_s24 }
  0x1b   :  { %p274_p11 = scmp.ne.s32.totalorder %s28_s24, %s273_s4  ;;  %p279_p13 = scmp.lt.s32.totalorder %s273_s4, %s273_s4 }
  0x1d   :  { %p280_p0 = por %p279_p13, %p278_p12 }
  0x1f   :  { %p281_p1 = pnand %p280_p0, %p274_p11 }
  0x21   :  { %284 = shalt.err (!%p281_p1)
}
  0x22   :  { %s317_s0 = smov 16   ;;  %s318_s5 = smov 1  }
  0x23   :  { %33 = dma.hbm_to_vmem [thread:$0]  %s378_s1, 256, %s28_s24, [#allocation6], %s317_s0, %s317_s0, %s318_s5  }
  0x24   :  { %307 = dma.done.wait [#allocation3], 2048  }
  0x25   :  { %308 = vsyncadd [#allocation3], 4294965248 }
  0x26   :  { %309 = dma.done.wait [#allocation6], 256  }
  0x27   :  { %310 = vsyncadd [#allocation6], 4294967040  ;;  %v40_v0 = vld [vmem:[#allocation2] sm:$0xff]  ;;  %v41_v2 = vld [vmem:[#allocation2 + $0x8] sm:$0xff]  ;;  %s319_s1 = smov [#allocation7]  }
  0x28   :  { %v218_v1 = vld [vmem:[#allocation5] ss:$0 sm:$0xff]  ;;  %v219_v4 = vld [vmem:[#allocation5 + $0x1] ss:$0 sm:$0xff]  ;;  %v42_v5 = vld [vmem:[#allocation2 + $0x10] sm:$0xff]  ;;  %s205_s8 = sshll.u32 %s319_s1, 4  ;;  %s206_s8 = int_to_ptr.vmem [resolvable:$true] %s205_s8 }
  0x29   :  { %v168_v3 = vadd.f32 %v218_v1, %v40_v0  ;;  %v220_v6 = vld [vmem:[#allocation5 + $0x2] ss:$0 sm:$0xff]  ;;  %v169_v7 = vadd.f32 %v219_v4, %v41_v2  ;;  %v43_v9 = vld [vmem:[#allocation2 + $0x18] sm:$0xff]  ;;  %v221_v10 = vld [vmem:[#allocation5 + $0x3] ss:$0 sm:$0xff]  ;;  %s285_s9 = scalar_lea.vmem %s206_s8, 2048  ;;  %p290_p3 = scmp.lt.s32.totalorder %s206_s8, %s206_s8 }
  0x2a   :  { %v170_v8 = vadd.f32 %v220_v6, %v42_v5  ;;  %v44_v11 = vld [vmem:[#allocation2 + $0x20] sm:$0xff]  ;;  %v171_v12 = vadd.f32 %v221_v10, %v43_v9  ;;  %v45_v14 = vld [vmem:[#allocation2 + $0x28] sm:$0xff]  ;;  %v46_v18 = vld [vmem:[#allocation2 + $0x30] sm:$0xff]  ;;  %p286_p2 = scmp.ne.s32.totalorder %s206_s8, %s285_s9  ;;  %p291_p4 = scmp.lt.s32.totalorder %s285_s9, %s285_s9 }
  0x2b   :  { %184 = vst [vmem:[#allocation7] sm:$0xff] %v168_v3  ;;  %v222_v13 = vld [vmem:[#allocation5 + $0x4] ss:$0 sm:$0xff]  ;;  %v223_v15 = vld [vmem:[#allocation5 + $0x5] ss:$0 sm:$0xff]  ;;  %185 = vst [vmem:[#allocation7 + $0x8] sm:$0xff] %v169_v7 }
  0x2c   :  { %186 = vst [vmem:[#allocation7 + $0x10] sm:$0xff] %v170_v8  ;;  %v172_v16 = vadd.f32 %v222_v13, %v44_v11  ;;  %v173_v17 = vadd.f32 %v223_v15, %v45_v14  ;;  %v224_v19 = vld [vmem:[#allocation5 + $0x6] ss:$0 sm:$0xff]  ;;  %v47_v20 = vld [vmem:[#allocation2 + $0x38] sm:$0xff]  ;;  %187 = vst [vmem:[#allocation7 + $0x18] sm:$0xff] %v171_v12  ;;  %p292_p5 = por %p291_p4, %p290_p3 }
  0x2d   :  { %v174_v21 = vadd.f32 %v224_v19, %v46_v18  ;;  %v225_v22 = vld [vmem:[#allocation5 + $0x7] ss:$0 sm:$0xff]  ;;  %v226_v24 = vld [vmem:[#allocation5 + $0x8] ss:$0 sm:$0xff]  ;;  %v227_v28 = vld [vmem:[#allocation5 + $0x9] ss:$0 sm:$0xff] }
  0x2e   :  { %v48_v23 = vld [vmem:[#allocation2 + $0x40] sm:$0xff]  ;;  %188 = vst [vmem:[#allocation7 + $0x20] sm:$0xff] %v172_v16  ;;  %189 = vst [vmem:[#allocation7 + $0x28] sm:$0xff] %v173_v17  ;;  %v175_v25 = vadd.f32 %v225_v22, %v47_v20  ;;  %v49_v27 = vld [vmem:[#allocation2 + $0x48] sm:$0xff]  ;;  %p293_p6 = pnand %p292_p5, %p286_p2 }
  0x2f   :  { %v176_v26 = vadd.f32 %v226_v24, %v48_v23  ;;  %v50_v29 = vld [vmem:[#allocation2 + $0x50] sm:$0xff]  ;;  %190 = vst [vmem:[#allocation7 + $0x30] sm:$0xff] %v174_v21  ;;  %v177_v30 = vadd.f32 %v227_v28, %v49_v27  ;;  %v228_v31 = vld [vmem:[#allocation5 + $0xa] ss:$0 sm:$0xff]  ;;  %v51_v32 = vld [vmem:[#allocation2 + $0x58] sm:$0xff] }
  0x30   :  { %v229_v33 = vld [vmem:[#allocation5 + $0xb] ss:$0 sm:$0xff]  ;;  %191 = vst [vmem:[#allocation7 + $0x38] sm:$0xff] %v175_v25  ;;  %v178_v34 = vadd.f32 %v228_v31, %v50_v29  ;;  %v52_v36 = vld [vmem:[#allocation2 + $0x60] sm:$0xff]  ;;  %v230_v37 = vld [vmem:[#allocation5 + $0xc] ss:$0 sm:$0xff] }
  0x31   :  { %192 = vst [vmem:[#allocation7 + $0x40] sm:$0xff] %v176_v26  ;;  %v179_v35 = vadd.f32 %v229_v33, %v51_v32  ;;  %v53_v38 = vld [vmem:[#allocation2 + $0x68] sm:$0xff]  ;;  %193 = vst [vmem:[#allocation7 + $0x48] sm:$0xff] %v177_v30  ;;  %v180_v39 = vadd.f32 %v230_v37, %v52_v36  ;;  %v54_v41 = vld [vmem:[#allocation2 + $0x70] sm:$0xff] }
  0x32   :  { %v231_v40 = vld [vmem:[#allocation5 + $0xd] ss:$0 sm:$0xff]  ;;  %v232_v42 = vld [vmem:[#allocation5 + $0xe] ss:$0 sm:$0xff]  ;;  %194 = vst [vmem:[#allocation7 + $0x50] sm:$0xff] %v178_v34  ;;  %v55_v45 = vld [vmem:[#allocation2 + $0x78] sm:$0xff] }
  0x33   :  { %195 = vst [vmem:[#allocation7 + $0x58] sm:$0xff] %v179_v35  ;;  %v181_v43 = vadd.f32 %v231_v40, %v53_v38  ;;  %v182_v44 = vadd.f32 %v232_v42, %v54_v41  ;;  %v233_v46 = vld [vmem:[#allocation5 + $0xf] ss:$0 sm:$0xff]  ;;  %196 = vst [vmem:[#allocation7 + $0x60] sm:$0xff] %v180_v39 }
  0x34   :  { %v183_v47 = vadd.f32 %v233_v46, %v55_v45 }
  0x35   :  { %197 = vst [vmem:[#allocation7 + $0x68] sm:$0xff] %v181_v43  ;;  %198 = vst [vmem:[#allocation7 + $0x70] sm:$0xff] %v182_v44 }
  0x36   :  { %199 = vst [vmem:[#allocation7 + $0x78] sm:$0xff] %v183_v47 }
  0x37   :  { %296 = shalt.err (!%p293_p6)
}
  0x38   :  { %s297_s12 = scalar_lea.hbm %s379_s2, 2048 }
  0x39   :  { %p298_p7 = scmp.ne.s32.totalorder %s379_s2, %s297_s12  ;;  %p301_p8 = scmp.lt.u32.totalorder %s297_s12, %s379_s2 }
  0x3b   :  { %p303_p9 = pnand %p301_p8, %p298_p7 }
  0x3d   :  { %306 = shalt.err (!%p303_p9)
}
  0x3e   :  { %211 = dma.vmem_to_hbm [thread:$0]  %s206_s8, 2048, %s379_s2, [#allocation4], %s314_s19, %s314_s19, %s315_s20  }
  0x3f   :  { %311 = dma.done.wait [#allocation4], 2048  }
  0x40   :  { %312 = vsyncadd [#allocation4], 4294965248 }
  0x41   :  { %215 = vsyncpa [#allocation3], 1 }
  0x42   :  { %216 = vsyncpa [#allocation6], 1 }
  0x43   :  { %217 = vsyncpa [#allocation4], 1 }

</bundles_post_ra>
